<compile_context>
chip_gen: v6e
topology: v6e:2x2x1
jax: 0.10.0
libtpu: 0.0.40
codegen_flags: <defaults>
</compile_context>

<pallas_src>
import functools
import math

import jax
import jax.numpy as jnp
from jax.experimental import pallas as pl
from jax.experimental.pallas import tpu as pltpu


_VMEM_LIMIT = 32 * 1024 * 1024  # safe on v5e/v6e/v7x; leaves headroom on v7x


def _tile(dim, target):
    """Use `target` as tile size when it evenly divides `dim`, else full dim."""
    if dim > target and dim % target == 0:
        return target
    return dim


# ---------------------------------------------------------------------------
# Fused LayerNorm + Linear (+ optional ReLU)
# ---------------------------------------------------------------------------

def _ln_linear_kernel(x_ref, g_ref, bt_ref, w_ref, b_ref, o_ref, *, eps, activation):
    x = x_ref[...].astype(jnp.float32)                 # (tm, K)
    mean = jnp.mean(x, axis=-1, keepdims=True)
    cent = x - mean
    var = jnp.mean(cent * cent, axis=-1, keepdims=True)
    xn = cent * jax.lax.rsqrt(var + eps)
    xn = xn * g_ref[...] + bt_ref[...]                 # LN affine (f32)
    y = jnp.dot(xn.astype(jnp.bfloat16), w_ref[...].astype(jnp.bfloat16),
                preferred_element_type=jnp.float32)    # MXU in bf16, acc f32
    y = y + b_ref[...]
    if activation == "relu":
        y = jnp.maximum(y, 0.0)
    o_ref[...] = y.astype(o_ref.dtype)


def ln_linear(x, gamma, beta, w, b, activation=None, eps=1e-5):
    """LayerNorm(x) @ w + b (+ReLU). x: [M, K], w: [K, N] -> [M, N]."""
    M, K = x.shape
    N = w.shape[1]
    tm = _tile(M, 256)
    tn = _tile(N, 256)
    grid = (M // tm, N // tn)
    return pl.pallas_call(
        functools.partial(_ln_linear_kernel, eps=eps, activation=activation),
        grid=grid,
        in_specs=[
            pl.BlockSpec((tm, K), lambda i, j: (i, 0)),
            pl.BlockSpec((1, K), lambda i, j: (0, 0)),
            pl.BlockSpec((1, K), lambda i, j: (0, 0)),
            pl.BlockSpec((K, tn), lambda i, j: (0, j)),
            pl.BlockSpec((1, tn), lambda i, j: (0, j)),
        ],
        out_specs=pl.BlockSpec((tm, tn), lambda i, j: (i, j)),
        out_shape=jax.ShapeDtypeStruct((M, N), jnp.float32),
        compiler_params=pltpu.CompilerParams(
            dimension_semantics=("parallel", "parallel"),
            vmem_limit_bytes=_VMEM_LIMIT),
    )(x, gamma.reshape(1, K), beta.reshape(1, K), w, b.reshape(1, N))


# ---------------------------------------------------------------------------
# Tiled Linear with K-reduction grid (+ optional ReLU / fused residual add)
# ---------------------------------------------------------------------------

def _linear_kernel(*refs, activation, has_residual):
    if has_residual:
        x_ref, w_ref, b_ref, res_ref, o_ref, acc_ref = refs
    else:
        x_ref, w_ref, b_ref, o_ref, acc_ref = refs
        res_ref = None
    k = pl.program_id(2)
    nk = pl.num_programs(2)

    @pl.when(k == 0)
    def _():
        acc_ref[...] = jnp.zeros_like(acc_ref)

    acc_ref[...] += jnp.dot(x_ref[...].astype(jnp.bfloat16),
                            w_ref[...].astype(jnp.bfloat16),
                            preferred_element_type=jnp.float32)

    @pl.when(k == nk - 1)
    def _():
        y = acc_ref[...] + b_ref[...]
        if activation == "relu":
            y = jnp.maximum(y, 0.0)
        if res_ref is not None:
            y = y + res_ref[...]
        o_ref[...] = y.astype(o_ref.dtype)


def linear(x, w, b, residual=None, activation=None):
    """x @ w + b (+ReLU) (+residual). x: [M, K], w: [K, N] -> [M, N]."""
    M, K = x.shape
    N = w.shape[1]
    tm = _tile(M, 256)
    tn = _tile(N, 256)
    tk = _tile(K, 512)
    grid = (M // tm, N // tn, K // tk)
    in_specs = [
        pl.BlockSpec((tm, tk), lambda i, j, k: (i, k)),
        pl.BlockSpec((tk, tn), lambda i, j, k: (k, j)),
        pl.BlockSpec((1, tn), lambda i, j, k: (0, j)),
    ]
    args = [x, w, b.reshape(1, N)]
    if residual is not None:
        in_specs.append(pl.BlockSpec((tm, tn), lambda i, j, k: (i, j)))
        args.append(residual)
    return pl.pallas_call(
        functools.partial(_linear_kernel, activation=activation,
                          has_residual=residual is not None),
        grid=grid,
        in_specs=in_specs,
        out_specs=pl.BlockSpec((tm, tn), lambda i, j, k: (i, j)),
        out_shape=jax.ShapeDtypeStruct((M, N), jnp.float32),
        scratch_shapes=[pltpu.VMEM((tm, tn), jnp.float32)],
        compiler_params=pltpu.CompilerParams(
            dimension_semantics=("parallel", "parallel", "arbitrary"),
            vmem_limit_bytes=_VMEM_LIMIT),
    )(*args)


# ---------------------------------------------------------------------------
# Attention kernels (fused qkv / kv inputs, lane-dense [L, D] output)
# ---------------------------------------------------------------------------

def _mha_body(q, k, v, neg_bias, num_heads):
    """q: (Lq, D), k/v: (Lkv, D) f32; neg_bias: (1, Lkv) additive pad bias."""
    Lq, D = q.shape
    hd = D // num_heads
    scale = 1.0 / math.sqrt(hd)
    outs = []
    for h in range(num_heads):           # static unroll; heads packed in lanes
        sl = slice(h * hd, (h + 1) * hd)
        qh = q[:, sl].astype(jnp.bfloat16)
        kh = k[:, sl].astype(jnp.bfloat16)
        vh = v[:, sl].astype(jnp.bfloat16)
        s = jax.lax.dot_general(qh, kh, (((1,), (1,)), ((), ())),
                                preferred_element_type=jnp.float32) * scale
        s = s + neg_bias                                  # mask bias in f32
        m = jnp.max(s, axis=-1, keepdims=True)
        p = jnp.exp(s - m)
        denom = jnp.sum(p, axis=-1, keepdims=True)
        o = jnp.dot(p.astype(jnp.bfloat16), vh,
                    preferred_element_type=jnp.float32)
        outs.append(o * pl.reciprocal(denom, approx=True))   # EUP, VALU relief
    return jnp.concatenate(outs, axis=-1)                    # (Lq, D) lane-dense


def _self_attn_kernel(qkv_ref, mask_ref, qmask_ref, o_ref, *, num_heads):
    qkv = qkv_ref[0].astype(jnp.float32)                  # (L, 3D)
    D = qkv.shape[-1] // 3
    q, k, v = qkv[:, :D], qkv[:, D:2 * D], qkv[:, 2 * D:]
    neg = mask_ref[0] * jnp.float32(-1e30)                # (1, L)
    o = _mha_body(q, k, v, neg, num_heads)
    o = o * (1.0 - qmask_ref[0])                          # zero padded queries
    o_ref[0] = o.astype(o_ref.dtype)


def _cross_attn_kernel(q_ref, kv_ref, mask_ref, o_ref, *, num_heads):
    q = q_ref[0].astype(jnp.float32)                      # (Lq, D)
    kvp = kv_ref[0].astype(jnp.float32)                   # (Lkv, 2D)
    D = q.shape[-1]
    k, v = kvp[:, :D], kvp[:, D:]
    neg = mask_ref[0] * jnp.float32(-1e30)                # (1, Lkv)
    o = _mha_body(q, k, v, neg, num_heads)
    o_ref[0] = o.astype(o_ref.dtype)


def self_attention(qkv, pad_mask, num_heads):
    """qkv: [B, L, 3D] fused projection; pad_mask: [B, L] (1.0 = pad)."""
    B, L, C = qkv.shape
    D = C // 3
    mask2 = pad_mask.astype(jnp.float32).reshape(B, 1, L)
    qmask = pad_mask.astype(jnp.float32).reshape(B, L, 1)
    return pl.pallas_call(
        functools.partial(_self_attn_kernel, num_heads=num_heads),
        grid=(B,),
        in_specs=[
            pl.BlockSpec((1, L, C), lambda b: (b, 0, 0)),
            pl.BlockSpec((1, 1, L), lambda b: (b, 0, 0)),
            pl.BlockSpec((1, L, 1), lambda b: (b, 0, 0)),
        ],
        out_specs=pl.BlockSpec((1, L, D), lambda b: (b, 0, 0)),
        out_shape=jax.ShapeDtypeStruct((B, L, D), jnp.float32),
        compiler_params=pltpu.CompilerParams(
            dimension_semantics=("parallel",), vmem_limit_bytes=_VMEM_LIMIT),
    )(qkv, mask2, qmask)


def cross_attention(qp, kvp, kv_mask, num_heads):
    """qp: [B, Lq, D]; kvp: [B, Lkv, 2D] fused; kv_mask: [B, Lkv] (1.0 = pad)."""
    B, Lq, D = qp.shape
    Lkv = kvp.shape[1]
    mask2 = kv_mask.astype(jnp.float32).reshape(B, 1, Lkv)
    return pl.pallas_call(
        functools.partial(_cross_attn_kernel, num_heads=num_heads),
        grid=(B,),
        in_specs=[
            pl.BlockSpec((1, Lq, D), lambda b: (b, 0, 0)),
            pl.BlockSpec((1, Lkv, 2 * D), lambda b: (b, 0, 0)),
            pl.BlockSpec((1, 1, Lkv), lambda b: (b, 0, 0)),
        ],
        out_specs=pl.BlockSpec((1, Lq, D), lambda b: (b, 0, 0)),
        out_shape=jax.ShapeDtypeStruct((B, Lq, D), jnp.float32),
        compiler_params=pltpu.CompilerParams(
            dimension_semantics=("parallel",), vmem_limit_bytes=_VMEM_LIMIT),
    )(qp, kvp, mask2)


# ---------------------------------------------------------------------------
# Transformer layers
# ---------------------------------------------------------------------------

def cross_attention_layer(p, q, kv, kv_mask, num_heads):
    B, Lq, D = q.shape
    Lkv = kv.shape[1]
    q2 = q.reshape(B * Lq, D)
    qp = ln_linear(q2, p["norm_q_g"], p["norm_q_b"],
                   p["q_w"], p["q_b"]).reshape(B, Lq, D)
    kvp = ln_linear(kv.reshape(B * Lkv, D), p["norm_kv_g"], p["norm_kv_b"],
                    p["kv_w"], p["kv_b"]).reshape(B, Lkv, 2 * D)
    attn = cross_attention(qp, kvp, kv_mask, num_heads)
    out = linear(attn.reshape(B * Lq, D), p["out_w"], p["out_b"],
                 residual=q2)                       # residual fused; dropout=id
    return out.reshape(B, Lq, D)


def self_attention_layer(p, x, pad_mask, num_heads):
    B, L, D = x.shape
    x2 = x.reshape(B * L, D)
    qkv = ln_linear(x2, p["norm1_g"], p["norm1_b"],
                    p["qkv_w"], p["qkv_b"]).reshape(B, L, 3 * D)
    attn = self_attention(qkv, pad_mask, num_heads)     # pad rows zeroed in-kernel
    x2 = linear(attn.reshape(B * L, D), p["out_w"], p["out_b"], residual=x2)
    h = ln_linear(x2, p["norm2_g"], p["norm2_b"],
                  p["ffn1_w"], p["ffn1_b"], activation="relu")
    out = linear(h, p["ffn2_w"], p["ffn2_b"], residual=x2)
    return out.reshape(B, L, D)


def flash_mz_vis_transformer(params, mz_embed, vis_embed=None, attn_mask=None,
                             *, num_heads):
    x = mz_embed
    B, L_mz, _ = x.shape
    if attn_mask is None:
        mz_mask = jnp.zeros((B, L_mz), jnp.float32)
        vis_mask = (jnp.zeros((B, vis_embed.shape[1]), jnp.float32)
                    if vis_embed is not None else None)
    else:
        # reference shares the same mask for cross-attn kv and self-attn padding
        mz_mask = attn_mask.astype(jnp.float32)
        vis_mask = attn_mask.astype(jnp.float32)
    if vis_embed is not None:
        for p in params["cross_layers"]:
            x = cross_attention_layer(p, x, vis_embed, vis_mask, num_heads)
    for p in params["self_layers"]:
        x = self_attention_layer(p, x, mz_mask, num_heads)
    return x


# ---------------------------------------------------------------------------
# Deterministic parameter initialization (matches module shapes)
# ---------------------------------------------------------------------------

def _linear_init(key, fan_in, fan_out):
    kw, kb = jax.random.split(key)
    bound = 1.0 / math.sqrt(fan_in)
    w = jax.random.uniform(kw, (fan_in, fan_out), jnp.float32, -bound, bound)
    b = jax.random.uniform(kb, (fan_out,), jnp.float32, -bound, bound)
    return w, b


def init_params(key, d_model, hidden_dim, num_cross_layers, num_self_layers):
    params = {"cross_layers": [], "self_layers": []}
    for _ in range(num_cross_layers):
        key, k1, k2, k3 = jax.random.split(key, 4)
        qw, qb = _linear_init(k1, d_model, d_model)
        kvw, kvb = _linear_init(k2, d_model, 2 * d_model)
        ow, ob = _linear_init(k3, d_model, d_model)
        params["cross_layers"].append({
            "norm_q_g": jnp.ones((d_model,), jnp.float32),
            "norm_q_b": jnp.zeros((d_model,), jnp.float32),
            "norm_kv_g": jnp.ones((d_model,), jnp.float32),
            "norm_kv_b": jnp.zeros((d_model,), jnp.float32),
            "q_w": qw, "q_b": qb,
            "kv_w": kvw, "kv_b": kvb,
            "out_w": ow, "out_b": ob,
        })
    for _ in range(num_self_layers):
        key, k1, k2, k3, k4 = jax.random.split(key, 5)
        qkvw, qkvb = _linear_init(k1, d_model, 3 * d_model)
        ow, ob = _linear_init(k2, d_model, d_model)
        f1w, f1b = _linear_init(k3, d_model, hidden_dim)
        f2w, f2b = _linear_init(k4, hidden_dim, d_model)
        params["self_layers"].append({
            "norm1_g": jnp.ones((d_model,), jnp.float32),
            "norm1_b": jnp.zeros((d_model,), jnp.float32),
            "norm2_g": jnp.ones((d_model,), jnp.float32),
            "norm2_b": jnp.zeros((d_model,), jnp.float32),
            "qkv_w": qkvw, "qkv_b": qkvb,
            "out_w": ow, "out_b": ob,
            "ffn1_w": f1w, "ffn1_b": f1b,
            "ffn2_w": f2w, "ffn2_b": f2b,
        })
    return params


if __name__ == "__main__":
    B, L_MZ, L_VIS = 2, 8, 8
    D_MODEL, HIDDEN, HEADS = 32, 64, 4
    N_CROSS, N_SELF = 1, 2

    key = jax.random.PRNGKey(0)
    k_mz, k_vis, k_par = jax.random.split(key, 3)
    mz_embed = jax.random.normal(k_mz, (B, L_MZ, D_MODEL), jnp.float32)
    vis_embed = jax.random.normal(k_vis, (B, L_VIS, D_MODEL), jnp.float32)
    params = init_params(k_par, D_MODEL, HIDDEN, N_CROSS, N_SELF)

    out = flash_mz_vis_transformer(params, mz_embed, vis_embed, attn_mask=None,
                                   num_heads=HEADS)
    jax.block_until_ready(out)
    assert out.shape == (B, L_MZ, D_MODEL)
    print("KERNEL_OK")
</pallas_src>

<mosaic_0001>
module attributes {stable_mosaic.version = 11 : i64} {
  func.func @_ln_linear_kernel(%arg0: i32, %arg1: i32, %arg2: memref<16x32xf32, #tpu.memory_space<vmem>>, %arg3: memref<1x32xf32, #tpu.memory_space<vmem>>, %arg4: memref<1x32xf32, #tpu.memory_space<vmem>>, %arg5: memref<32x32xf32, #tpu.memory_space<vmem>>, %arg6: memref<1x32xf32, #tpu.memory_space<vmem>>, %arg7: memref<16x32xf32, #tpu.memory_space<vmem>>) attributes {dimension_semantics = [#tpu.dimension_semantics<parallel>, #tpu.dimension_semantics<parallel>], iteration_bounds = array<i64: 1, 1>, scalar_prefetch = 0 : i64, scratch_operands = 0 : i64, tpu.core_type = #tpu.core_type<tc>, window_params = [{transform_indices = @transform_0, window_bounds = array<i64: 16, 32>}, {pipeline_mode = #tpu.pipeline_mode<synchronous>, transform_indices = @transform_1, window_bounds = array<i64: 1, 32>}, {pipeline_mode = #tpu.pipeline_mode<synchronous>, transform_indices = @transform_2, window_bounds = array<i64: 1, 32>}, {transform_indices = @transform_3, window_bounds = array<i64: 32, 32>}, {transform_indices = @transform_4, window_bounds = array<i64: 1, 32>}, {transform_indices = @transform_5, window_bounds = array<i64: 16, 32>}]} {
    %c0 = arith.constant 0 : index
    %c0_0 = arith.constant 0 : index
    %0 = vector.load %arg2[%c0, %c0_0] : memref<16x32xf32, #tpu.memory_space<vmem>>, vector<16x32xf32>
    %cst = arith.constant dense<0.000000e+00> : vector<16xf32>
    %1 = vector.multi_reduction <add>, %0, %cst [1] : vector<16x32xf32> to vector<16xf32>
    %2 = vector.shape_cast %1 : vector<16xf32> to vector<16x1xf32>
    %cst_1 = arith.constant 3.200000e+01 : f32
    %3 = vector.broadcast %cst_1 : f32 to vector<16x1xf32>
    %4 = arith.divf %2, %3 : vector<16x1xf32>
    %5 = vector.broadcast %4 : vector<16x1xf32> to vector<16x32xf32>
    %6 = arith.subf %0, %5 : vector<16x32xf32>
    %7 = arith.mulf %6, %6 : vector<16x32xf32>
    %cst_2 = arith.constant dense<0.000000e+00> : vector<16xf32>
    %8 = vector.multi_reduction <add>, %7, %cst_2 [1] : vector<16x32xf32> to vector<16xf32>
    %9 = vector.shape_cast %8 : vector<16xf32> to vector<16x1xf32>
    %cst_3 = arith.constant 3.200000e+01 : f32
    %10 = vector.broadcast %cst_3 : f32 to vector<16x1xf32>
    %11 = arith.divf %9, %10 : vector<16x1xf32>
    %cst_4 = arith.constant 9.99999974E-6 : f32
    %12 = vector.broadcast %cst_4 : f32 to vector<16x1xf32>
    %13 = arith.addf %11, %12 : vector<16x1xf32>
    %14 = math.rsqrt %13 : vector<16x1xf32>
    %15 = vector.broadcast %14 : vector<16x1xf32> to vector<16x32xf32>
    %16 = arith.mulf %6, %15 : vector<16x32xf32>
    %c0_5 = arith.constant 0 : index
    %c0_6 = arith.constant 0 : index
    %17 = vector.load %arg3[%c0_5, %c0_6] : memref<1x32xf32, #tpu.memory_space<vmem>>, vector<1x32xf32>
    %18 = vector.broadcast %17 : vector<1x32xf32> to vector<16x32xf32>
    %19 = arith.mulf %16, %18 : vector<16x32xf32>
    %c0_7 = arith.constant 0 : index
    %c0_8 = arith.constant 0 : index
    %20 = vector.load %arg4[%c0_7, %c0_8] : memref<1x32xf32, #tpu.memory_space<vmem>>, vector<1x32xf32>
    %21 = vector.broadcast %20 : vector<1x32xf32> to vector<16x32xf32>
    %22 = arith.addf %19, %21 : vector<16x32xf32>
    %23 = arith.truncf %22 : vector<16x32xf32> to vector<16x32xbf16>
    %c0_9 = arith.constant 0 : index
    %c0_10 = arith.constant 0 : index
    %24 = vector.load %arg5[%c0_9, %c0_10] : memref<32x32xf32, #tpu.memory_space<vmem>>, vector<32x32xf32>
    %25 = arith.truncf %24 : vector<32x32xf32> to vector<32x32xbf16>
    %cst_11 = arith.constant dense<0.000000e+00> : vector<16x32xf32>
    %26 = tpu.matmul %23, %25, %cst_11 {dimension_numbers = #tpu.dot_dimension_numbers<[1], [0], [0], [1], [0, 0, 1, 1], [], []>} : vector<16x32xbf16>, vector<32x32xbf16>, vector<16x32xf32> -> vector<16x32xf32>
    %c0_12 = arith.constant 0 : index
    %c0_13 = arith.constant 0 : index
    %27 = vector.load %arg6[%c0_12, %c0_13] : memref<1x32xf32, #tpu.memory_space<vmem>>, vector<1x32xf32>
    %28 = vector.broadcast %27 : vector<1x32xf32> to vector<16x32xf32>
    %29 = arith.addf %26, %28 : vector<16x32xf32>
    %c0_14 = arith.constant 0 : index
    %c0_15 = arith.constant 0 : index
    %30 = vector.load %arg7[%c0_14, %c0_15] : memref<16x32xf32, #tpu.memory_space<vmem>>, vector<16x32xf32>
    tpu.vector_store %arg7[%c0_14, %c0_15], %29 {strides = array<i32>} : memref<16x32xf32, #tpu.memory_space<vmem>>, vector<16x32xf32>,
    return
  }
  func.func @transform_0(%arg0: i32, %arg1: i32) -> (i32, i32) {
    %c0_i32 = arith.constant 0 : i32
    %c0_i32_0 = arith.constant 0 : i32
    return %arg0, %c0_i32 : i32, i32
  }
  func.func @transform_1(%arg0: i32, %arg1: i32) -> (i32, i32) {
    %c0_i32 = arith.constant 0 : i32
    %c0_i32_0 = arith.constant 0 : i32
    %c0_i32_1 = arith.constant 0 : i32
    return %c0_i32, %c0_i32_0 : i32, i32
  }
  func.func @transform_2(%arg0: i32, %arg1: i32) -> (i32, i32) {
    %c0_i32 = arith.constant 0 : i32
    %c0_i32_0 = arith.constant 0 : i32
    %c0_i32_1 = arith.constant 0 : i32
    return %c0_i32, %c0_i32_0 : i32, i32
  }
  func.func @transform_3(%arg0: i32, %arg1: i32) -> (i32, i32) {
    %c0_i32 = arith.constant 0 : i32
    %c0_i32_0 = arith.constant 0 : i32
    return %c0_i32, %arg1 : i32, i32
  }
  func.func @transform_4(%arg0: i32, %arg1: i32) -> (i32, i32) {
    %c0_i32 = arith.constant 0 : i32
    %c0_i32_0 = arith.constant 0 : i32
    return %c0_i32, %arg1 : i32, i32
  }
  func.func @transform_5(%arg0: i32, %arg1: i32) -> (i32, i32) {
    %c0_i32 = arith.constant 0 : i32
    return %arg0, %arg1 : i32, i32
  }
}

</mosaic_0001>

<bundles_post_ra>
// kernel: tpu_custom_call.1
= control target key start
LH: loop header
LB: loop body
LE: loop exit
PB: predicated region body
PF: predicated region fallthrough
CT: control target
= control target key end

     0   :  { %10 = vsyncpa [#allocation3], 0  ;;  %s339_s0 = inlined_call_operand.hbm [shape: f32[16,32], index: 0, kind: input, shape index: {}]   ;;  %s340_s1 = inlined_call_operand.vmem [shape: f32[1,32], index: 1, kind: input, shape index: {}]   ;;  %s341_s2 = inlined_call_operand.vmem [shape: f32[1,32], index: 2, kind: input, shape index: {}]   ;;  %s342_s3 = inlined_call_operand.hbm [shape: f32[32,32], index: 3, kind: input, shape index: {}]   ;;  %s343_s4 = inlined_call_operand.vmem [shape: f32[1,32], index: 4, kind: input, shape index: {}]   ;;  %s344_s5 = inlined_call_operand.hbm [shape: f32[16,32], index: 5, kind: output, shape index: {}]  }
   0x1   :  { %11 = vsyncpa [#allocation6], 0 }
   0x2   :  { %12 = vsyncpa [#allocation4], 0  ;;  %s268_s18 = smov [#allocation2]  }
   0x3   :  { %s18_s19 = sshll.u32 %s268_s18, 4  ;;  %s19_s19 = int_to_ptr.vmem [resolvable:$true] %s18_s19 }
   0x4   :  { %s210_s20 = scalar_lea.vmem %s19_s19, 256  ;;  %p215_p1 = scmp.lt.s32.totalorder %s19_s19, %s19_s19 }
   0x5   :  { %p211_p0 = scmp.ne.s32.totalorder %s19_s19, %s210_s20  ;;  %p216_p2 = scmp.lt.s32.totalorder %s210_s20, %s210_s20 }
   0x7   :  { %p217_p3 = por %p216_p2, %p215_p1 }
   0x9   :  { %p218_p4 = pnand %p217_p3, %p211_p0 }
   0xb   :  { %221 = shalt.err (!%p218_p4)
}
   0xc   :  { %s269_s21 = smov 128   ;;  %s270_s22 = smov 8  }
   0xd   :  { %24 = dma.hbm_to_vmem [thread:$0]  %s339_s0, 256, %s19_s19, [#allocation3], %s269_s21, %s269_s21, %s270_s22  }
   0xe   :  { %s271_s25 = smov [#allocation5]  }
   0xf   :  { %s34_s26 = sshll.u32 %s271_s25, 4  ;;  %s35_s26 = int_to_ptr.vmem [resolvable:$true] %s34_s26 }
  0x10   :  { %s230_s27 = scalar_lea.vmem %s35_s26, 512  ;;  %p235_p6 = scmp.lt.s32.totalorder %s35_s26, %s35_s26 }
  0x11   :  { %p231_p5 = scmp.ne.s32.totalorder %s35_s26, %s230_s27  ;;  %p236_p7 = scmp.lt.s32.totalorder %s230_s27, %s230_s27 }
  0x13   :  { %p237_p8 = por %p236_p7, %p235_p6 }
  0x15   :  { %p238_p9 = pnand %p237_p8, %p231_p5 }
  0x17   :  { %241 = shalt.err (!%p238_p9)
}
  0x18   :  { %40 = dma.hbm_to_vmem [thread:$0]  %s342_s3, 512, %s35_s26, [#allocation6], %s269_s21, %s269_s21, %s270_s22  }
  0x19   :  { %262 = dma.done.wait [#allocation3], 256  }
  0x1a   :  { %263 = vsyncadd [#allocation3], 4294967040 }
  0x1b   :  { %264 = dma.done.wait [#allocation6], 512  }
  0x1c   :  { %265 = vsyncadd [#allocation6], 4294966784  ;;  %vm52_vm0 = vcmask 261120   ;;  %v50_v0 = vld [vmem:[#allocation2] sm:$0xff]  ;;  %v51_v1 = vld [vmem:[#allocation2 + $0x8] sm:$0xff]  ;;  %v272_v17 = vmov 0.0  }
  0x1d   :  { %v53_v2 = vsel %vm52_vm0, %v50_v0, 0.0  ;;  %v56_v3 = vsel %vm52_vm0, %v51_v1, 0.0  ;;  %v101_v14 = vld [vmem:[#allocation5 + $0x10] sm:$0xff]  ;;  %v102_v15 = vld [vmem:[#allocation5 + $0x18] sm:$0xff]  ;;  %v99_v16 = vld [vmem:[#allocation5] sm:$0xff]  ;;  %183 = vmatprep.subr.bf16.mxu0 %v272_v17  ;;  %vm273_vm1 = vmmov 0  }
  0x1e   :  { %54 = vadd.xlane.f32.xlu0 %v53_v2  ;;  %v104_v18 = vpack.c.bf16 %v102_v15, %v101_v14  ;;  %v100_v19 = vld [vmem:[#allocation5 + $0x8] sm:$0xff]  ;;  %187 = vmatprep.mubr.msk.bf16.mxu0 %vm273_vm1, %v272_v17  ;;  %v176_v29 = vld [vmem:[%s340_s1] ss:$0 sm:$0xff]  ;;  %s274_s1 = smov [#allocation7]  }
  0x1f   :  { %v103_v20 = vpack.c.bf16 %v100_v19, %v99_v16  ;;  %v177_v33 = vld [vmem:[%s341_s2] ss:$0 sm:$0xff]  ;;  %s163_s9 = sshll.u32 %s274_s1, 4  ;;  %s164_s9 = int_to_ptr.vmem [resolvable:$true] %s163_s9 }
  0x20   :  { %184 = vmatpush3.bf16.msra.mxu0 %v104_v18  ;;  %v178_v38 = vld [vmem:[%s343_s4] ss:$0 sm:$0xff]  ;;  %s242_s2 = scalar_lea.vmem %s164_s9, 256  ;;  %p247_p11 = scmp.lt.s32.totalorder %s164_s9, %s164_s9 }
  0x21   :  { %185 = vmatprep.subr.bf16.mxu0 %v272_v17  ;;  %p243_p10 = scmp.ne.s32.totalorder %s164_s9, %s242_s2  ;;  %p248_p12 = scmp.lt.s32.totalorder %s242_s2, %s242_s2 }
  0x22   :  { %57 = vadd.xlane.f32.xlu0 %v56_v3 }
  0x23   :  { %p249_p13 = por %p248_p12, %p247_p11 }
  0x24   :  { %186 = vmatpush3.bf16.msra.mxu0 %v103_v20 }
  0x25   :  { %p250_p0 = pnand %p249_p13, %p243_p10 }
  0xa7   :  { %v55_v4 = vpop.xlane.xlu0 %54 }
  0xa8   :  { %v60_v5 = vmul.f32 0.03125, %v55_v4 }
  0xaa   :  { %v62_v6 = vsub.f32 %v50_v0, %v60_v5 }
  0xab   :  { %v58_v7 = vpop.xlane.xlu0 %57 }
  0xac   :  { %v61_v8 = vmul.f32 0.03125, %v58_v7  ;;  %v64_v9 = vmul.f32 %v62_v6, %v62_v6 }
  0xae   :  { %v63_v10 = vsub.f32 %v51_v1, %v61_v8  ;;  %v66_v11 = vsel %vm52_vm0, %v64_v9, 0.0 }
  0xaf   :  { %67 = vadd.xlane.f32.xlu1 %v66_v11 }
  0xb0   :  { %v65_v12 = vmul.f32 %v63_v10, %v63_v10 }
  0xb2   :  { %v69_v13 = vsel %vm52_vm0, %v65_v12, 0.0 }
  0xb3   :  { %70 = vadd.xlane.f32.xlu1 %v69_v13 }
 0x138   :  { %v68_v21 = vpop.xlane.xlu1 %67 }
 0x139   :  { %v72_v22 = vmul.f32 0.03125, %v68_v21 }
 0x13b   :  { %v74_v23 = vadd.f32 1e-05, %v72_v22 }
 0x13c   :  { %v71_v24 = vpop.xlane.xlu1 %70 }
 0x13d   :  { %198 = vrsqrt.f32 %v74_v23  ;;  %v73_v25 = vmul.f32 0.03125, %v71_v24 }
 0x13f   :  { %v75_v26 = vadd.f32 1e-05, %v73_v25 }
 0x141   :  { %200 = vrsqrt.f32 %v75_v26 }
 0x14a   :  { %v199_v27 = vpop.eup %198 }
 0x14b   :  { %v78_v28 = vmul.f32 %v199_v27, %v62_v6 }
 0x14d   :  { %v87_v32 = vmul.f32 %v176_v29, %v78_v28 }
 0x14e   :  { %v201_v30 = vpop.eup %200 }
 0x14f   :  { %v79_v31 = vmul.f32 %v201_v30, %v63_v10  ;;  %v96_v35 = vadd.f32 %v177_v33, %v87_v32 }
 0x151   :  { %v88_v34 = vmul.f32 %v176_v29, %v79_v31 }
 0x153   :  { %v97_v36 = vadd.f32 %v177_v33, %v88_v34 }
 0x155   :  { %v98_v37 = vpack.c.bf16 %v97_v36, %v96_v35 }
 0x157   :  { %188 = vmatmul.mubr.msk.bf16.vlgmr.msra.gmra.mxu0 %vm52_vm0, %v98_v37 }
 0x217   :  { %v149_v39 = vpop.f32.mrf.mxu0 }
 0x218   :  { %v150_v40 = vadd.f32 %v178_v38, %v149_v39 }
 0x219   :  { %v189_v41 = vpop.f32.mrf.mxu0 }
 0x21a   :  { %156 = vst.msk [vmem:[#allocation7] sm:$0xff] %vm52_vm0, %v150_v40 }
 0x21b   :  { %v152_v42 = vpop.f32.mrf.mxu0 }
 0x21c   :  { %v153_v43 = vadd.f32 %v178_v38, %v152_v42 }
 0x21d   :  { %v190_v44 = vpop.f32.mrf.mxu0 }
 0x21e   :  { %157 = vst.msk [vmem:[#allocation7 + $0x8] sm:$0xff] %vm52_vm0, %v153_v43 }
 0x21f   :  { %253 = shalt.err (!%p250_p0)
}
 0x220   :  { %169 = dma.vmem_to_hbm [thread:$0]  %s164_s9, 256, %s344_s5, [#allocation4], %s269_s21, %s269_s21, %s270_s22  }
 0x221   :  { %266 = dma.done.wait [#allocation4], 256  }
 0x222   :  { %267 = vsyncadd [#allocation4], 4294967040 }
 0x223   :  { %173 = vsyncpa [#allocation3], 1 }
 0x224   :  { %174 = vsyncpa [#allocation6], 1 }
 0x225   :  { %175 = vsyncpa [#allocation4], 1 }

</bundles_post_ra>
